<compile_context>
chip_gen: v7x
topology: tpu7x:2x2x1
jax: 0.10.0
libtpu: 0.0.40
codegen_flags: <defaults>
</compile_context>

<pallas_src>
import functools

import numpy as np
import jax
import jax.numpy as jnp
from jax.experimental import pallas as pl
from jax.experimental.pallas import tpu as pltpu

NUM_BLOCKS = 3  # three residual channel-mixing blocks


def _rgu_channel_mixer_kernel(x_ref, w1t_ref, b1_ref, w2t_ref, b2_ref, o_ref,
                              *, tb, hw, num_blocks):
    """Fused channel-mixer + global average pool for one batch tile.

    x_ref  : (TB, C, HW)  f32   activations (channels on sublanes, HW on lanes)
    w1t_ref: (NB, CH, C)  f32   W1^T  (VMEM resident; VPU path)
    b1_ref : (NB, CH, 1)  f32
    w2t_ref: (NB, C, CH)  bf16  W2^T  (VMEM resident; MXU path)
    b2_ref : (NB, C, 1)   f32
    o_ref  : (1, C, TB)   f32   pooled output slab for this batch tile
    """
    # Fold the batch tile into the lane (N) axis: one (C, TB*HW) slab so every
    # projection below runs exactly once per block per grid step.
    if tb == 1:
        h = x_ref[0]                                                  # (C, HW)
    else:
        h = jnp.concatenate([x_ref[t] for t in range(tb)], axis=-1)   # (C, TB*HW)
    c = h.shape[0]

    for i in range(num_blocks):                     # static loop over 3 blocks
        w1t = w1t_ref[i]                            # (CH, C)  f32
        b1 = b1_ref[i]                              # (CH, 1)  f32
        w2t = w2t_ref[i]                            # (C, CH)  bf16
        b2 = b2_ref[i]                              # (C, 1)   f32

        # First projection, K = C = 4: unrolled VPU broadcast-MACs in f32.
        # (A K=4 MXU dot is pure fill/drain; this also avoids casting the
        # residual stream h to bf16.)
        z = w1t[:, 0:1] * h[0:1, :]                                    # (CH, N)
        for cc in range(1, c):
            z = z + w1t[:, cc:cc + 1] * h[cc:cc + 1, :]
        z = jnp.maximum(z + b1, 0.0)                                   # bias+ReLU, f32

        # Second projection, K = CH = 32: one MXU dot over the whole
        # batch-folded N axis; bf16 operands, f32 accumulation.
        dh = jnp.dot(w2t, z.astype(jnp.bfloat16),
                     preferred_element_type=jnp.float32)               # (C, N)
        h = h + dh + b2                                                # residual, f32

    # Global average pool over HW: one reduce producing the (C, TB) slab,
    # written with a single dense store per grid step.
    o_ref[0] = jnp.mean(h.reshape(c, tb, hw), axis=-1)                 # (C, TB)


def _padded_vmem_bytes(shape, dtype):
    """Conservative VMEM footprint of one buffer (accounts for tile padding)."""
    itemsize = np.dtype(dtype).itemsize
    sublane = {4: 8, 2: 16, 1: 32}.get(itemsize, 8)
    shape = tuple(shape)
    if len(shape) == 1:
        shape = (1,) + shape
    *lead, s, l = shape
    s_p = -(-s // sublane) * sublane
    l_p = -(-l // 128) * 128
    n = 1
    for d in lead:
        n *= d
    return n * s_p * l_p * itemsize


def _vmem_budget_bytes():
    """Per-generation VMEM budget (v7x: 64 MiB physical; v5e/v6e: 128 MiB)."""
    cap = 64 * 1024 * 1024  # assume smallest-VMEM generation (v7x) if unknown
    try:
        cap = int(pltpu.get_tpu_info().vmem_capacity_bytes)
    except Exception:
        pass
    return (cap * 3) // 4   # leave headroom for compiler-internal scratch


def _choose_batch_tile(batch, resident_bytes, act_row_bytes, out_buf_bytes,
                       budget_bytes):
    """Largest divisor of `batch` that fits VMEM and keeps >= ~8 grid steps."""
    min_steps = 8                                        # pipelining + megacore
    free = budget_bytes - resident_bytes - 2 * out_buf_bytes
    max_tb_vmem = max(1, free // (2 * act_row_bytes))    # 2x: double buffering
    max_tb_steps = max(1, batch // min_steps)            # keep many grid steps
    cap = int(max(1, min(max_tb_vmem, max_tb_steps)))
    tb = 1
    for d in range(1, cap + 1):
        if batch % d == 0:
            tb = d
    return tb


def rgu_channel_mixer_forward(x_nchw, w1, b1, w2, b2):
    """x_nchw: (B, C, H, W) f32 -> (B, C) pooled channel-mixed features."""
    B, C, H, W = x_nchw.shape
    HW = H * W
    NB, _, CH = w1.shape

    # Channels-on-sublane / HW-on-lane layout: a free reshape, NO transpose pass.
    x = x_nchw.reshape(B, C, HW)

    # One-time tiny parameter prep: pre-transpose weights (no in-kernel
    # transpose).  W1^T stays f32 (VPU path); W2^T is cast to bf16 for the MXU.
    w1t = jnp.transpose(w1, (0, 2, 1)).astype(jnp.float32)       # (NB, CH, C)
    w2t = jnp.transpose(w2, (0, 2, 1)).astype(jnp.bfloat16)      # (NB, C, CH)
    b1k = b1.reshape(NB, CH, 1).astype(jnp.float32)              # (NB, CH, 1)
    b2k = b2.reshape(NB, C, 1).astype(jnp.float32)               # (NB, C, 1)

    # VMEM accounting WITH layout padding (f32 C=4 pads to 8 sublanes; lanes to
    # 128).  Resident weights counted double-buffered to stay conservative.
    budget = _vmem_budget_bytes()
    resident = 2 * (_padded_vmem_bytes(w1t.shape, w1t.dtype)
                    + _padded_vmem_bytes(w2t.shape, w2t.dtype)
                    + _padded_vmem_bytes(b1k.shape, b1k.dtype)
                    + _padded_vmem_bytes(b2k.shape, b2k.dtype))
    act_row = _padded_vmem_bytes((1, C, HW), jnp.float32)        # one batch row / buffer
    out_est = _padded_vmem_bytes((1, C, 128), jnp.float32)       # pooled slab estimate

    tb = _choose_batch_tile(B, resident, act_row, out_est, budget)
    num_steps = B // tb
    out_buf = _padded_vmem_bytes((1, C, tb), jnp.float32)
    assert resident + 2 * tb * act_row + 2 * out_buf <= budget, (
        "VMEM budget exceeded; stream per-block weights / shrink batch tile")

    kernel = functools.partial(_rgu_channel_mixer_kernel,
                               tb=tb, hw=HW, num_blocks=NB)

    flops = 2 * B * HW * NB * (C * CH + CH * C)
    bytes_accessed = (x.size * x.dtype.itemsize
                      + w1t.size * w1t.dtype.itemsize
                      + w2t.size * w2t.dtype.itemsize
                      + b1k.size * 4 + b2k.size * 4
                      + B * C * 4)

    out = pl.pallas_call(
        kernel,
        out_shape=jax.ShapeDtypeStruct((num_steps, C, tb), jnp.float32),
        grid_spec=pltpu.PrefetchScalarGridSpec(
            num_scalar_prefetch=0,
            grid=(num_steps,),
            in_specs=[
                pl.BlockSpec((tb, C, HW), lambda g: (g, 0, 0)),   # activations (streamed)
                pl.BlockSpec((NB, CH, C), lambda g: (0, 0, 0)),   # W1^T (resident, f32/VPU)
                pl.BlockSpec((NB, CH, 1), lambda g: (0, 0, 0)),   # b1
                pl.BlockSpec((NB, C, CH), lambda g: (0, 0, 0)),   # W2^T (resident, bf16/MXU)
                pl.BlockSpec((NB, C, 1), lambda g: (0, 0, 0)),    # b2
            ],
            out_specs=pl.BlockSpec((1, C, tb), lambda g: (g, 0, 0)),
        ),
        compiler_params=pltpu.CompilerParams(
            dimension_semantics=("parallel",),
            vmem_limit_bytes=int(budget)),
        cost_estimate=pl.CostEstimate(flops=int(flops), transcendentals=0,
                                      bytes_accessed=int(bytes_accessed)),
    )(x, w1t, b1k, w2t, b2k)

    # (num_steps, C, tb) -> (B, C): tiny glue transpose/reshape (B*C floats).
    return jnp.transpose(out, (0, 2, 1)).reshape(B, C)


def rgu_channel_mixer_reference(x_nchw, w1, b1, w2, b2):
    """Pure-JAX f32 reference with identical semantics."""
    B, C, H, W = x_nchw.shape
    h = jnp.transpose(x_nchw, (0, 2, 3, 1)).reshape(B, H * W, C)
    for i in range(w1.shape[0]):
        z = jnp.maximum(h @ w1[i] + b1[i], 0.0)
        h = h + z @ w2[i] + b2[i]
    return jnp.mean(h, axis=1)  # (B, C)


if __name__ == "__main__":
    # Small shapes: batch=2, channels=4, spatial=16x16, hidden=32.
    B, C, H, W = 2, 4, 16, 16
    CH = 32

    key = jax.random.PRNGKey(0)
    kx, k1, k2, k3, k4 = jax.random.split(key, 5)

    x = jax.random.normal(kx, (B, C, H, W), dtype=jnp.float32)

    # Deterministic synthetic parameters (scaled to keep residuals well-behaved).
    w1 = jax.random.normal(k1, (NUM_BLOCKS, C, CH), dtype=jnp.float32) * 0.1
    b1 = jax.random.normal(k2, (NUM_BLOCKS, 1, CH), dtype=jnp.float32) * 0.01
    w2 = jax.random.normal(k3, (NUM_BLOCKS, CH, C), dtype=jnp.float32) * 0.1
    b2 = jax.random.normal(k4, (NUM_BLOCKS, 1, C), dtype=jnp.float32) * 0.01

    out = jax.block_until_ready(rgu_channel_mixer_forward(x, w1, b1, w2, b2))
    ref = jax.block_until_ready(rgu_channel_mixer_reference(x, w1, b1, w2, b2))

    assert out.shape == (B, C), out.shape
    # Residual stream + first projection + pool are pure f32 now; only the
    # K=32 MXU dot uses bf16 operands, so the error vs the f32 reference is
    # small.  Tolerance kept comfortable.
    assert jnp.allclose(out, ref, atol=1e-2, rtol=1e-2), (out, ref)
    print("KERNEL_OK")
</pallas_src>

<mosaic_0001>
module attributes {stable_mosaic.version = 11 : i64} {
  func.func @_rgu_channel_mixer_kernel(%arg0: i32, %arg1: memref<1x4x256xf32, #tpu.memory_space<vmem>>, %arg2: memref<3x32x4xf32, #tpu.memory_space<vmem>>, %arg3: memref<3x32x1xf32, #tpu.memory_space<vmem>>, %arg4: memref<3x4x32xbf16, #tpu.memory_space<vmem>>, %arg5: memref<3x4x1xf32, #tpu.memory_space<vmem>>, %arg6: memref<1x4x1xf32, #tpu.memory_space<vmem>>) attributes {dimension_semantics = [#tpu.dimension_semantics<parallel>], iteration_bounds = array<i64: 2>, scalar_prefetch = 0 : i64, scratch_operands = 0 : i64, tpu.core_type = #tpu.core_type<tc>, window_params = [{transform_indices = @transform_0, window_bounds = array<i64: 1, 4, 256>}, {pipeline_mode = #tpu.pipeline_mode<synchronous>, transform_indices = @transform_1, window_bounds = array<i64: 3, 32, 4>}, {pipeline_mode = #tpu.pipeline_mode<synchronous>, transform_indices = @transform_2, window_bounds = array<i64: 3, 32, 1>}, {pipeline_mode = #tpu.pipeline_mode<synchronous>, transform_indices = @transform_3, window_bounds = array<i64: 3, 4, 32>}, {pipeline_mode = #tpu.pipeline_mode<synchronous>, transform_indices = @transform_4, window_bounds = array<i64: 3, 4, 1>}, {transform_indices = @transform_5, window_bounds = array<i64: 1, 4, 1>}]} {
    %c0 = arith.constant 0 : index
    %c0_0 = arith.constant 0 : index
    %c0_1 = arith.constant 0 : index
    %0 = vector.load %arg1[%c0, %c0_0, %c0_1] : memref<1x4x256xf32, #tpu.memory_space<vmem>>, vector<1x4x256xf32>
    %1 = vector.shape_cast %0 : vector<1x4x256xf32> to vector<4x256xf32>
    %c0_2 = arith.constant 0 : index
    %c0_3 = arith.constant 0 : index
    %c0_4 = arith.constant 0 : index
    %2 = vector.load %arg2[%c0_2, %c0_3, %c0_4] : memref<3x32x4xf32, #tpu.memory_space<vmem>>, vector<1x32x4xf32>
    %3 = vector.shape_cast %2 : vector<1x32x4xf32> to vector<32x4xf32>
    %c0_5 = arith.constant 0 : index
    %c0_6 = arith.constant 0 : index
    %c0_7 = arith.constant 0 : index
    %4 = vector.load %arg3[%c0_5, %c0_6, %c0_7] : memref<3x32x1xf32, #tpu.memory_space<vmem>>, vector<1x32x1xf32>
    %5 = vector.shape_cast %4 : vector<1x32x1xf32> to vector<32x1xf32>
    %c0_8 = arith.constant 0 : index
    %c0_9 = arith.constant 0 : index
    %c0_10 = arith.constant 0 : index
    %6 = vector.load %arg4[%c0_8, %c0_9, %c0_10] : memref<3x4x32xbf16, #tpu.memory_space<vmem>>, vector<1x4x32xbf16>
    %7 = vector.shape_cast %6 : vector<1x4x32xbf16> to vector<4x32xbf16>
    %c0_11 = arith.constant 0 : index
    %c0_12 = arith.constant 0 : index
    %c0_13 = arith.constant 0 : index
    %8 = vector.load %arg5[%c0_11, %c0_12, %c0_13] : memref<3x4x1xf32, #tpu.memory_space<vmem>>, vector<1x4x1xf32>
    %9 = vector.shape_cast %8 : vector<1x4x1xf32> to vector<4x1xf32>
    %10 = vector.extract_strided_slice %3 {offsets = [0, 0], sizes = [32, 1], strides = [1, 1]} : vector<32x4xf32> to vector<32x1xf32>
    %11 = vector.extract_strided_slice %1 {offsets = [0, 0], sizes = [1, 256], strides = [1, 1]} : vector<4x256xf32> to vector<1x256xf32>
    %12 = vector.broadcast %10 : vector<32x1xf32> to vector<32x256xf32>
    %13 = vector.broadcast %11 : vector<1x256xf32> to vector<32x256xf32>
    %14 = arith.mulf %12, %13 : vector<32x256xf32>
    %15 = vector.extract_strided_slice %3 {offsets = [0, 1], sizes = [32, 1], strides = [1, 1]} : vector<32x4xf32> to vector<32x1xf32>
    %16 = vector.extract_strided_slice %1 {offsets = [1, 0], sizes = [1, 256], strides = [1, 1]} : vector<4x256xf32> to vector<1x256xf32>
    %17 = vector.broadcast %15 : vector<32x1xf32> to vector<32x256xf32>
    %18 = vector.broadcast %16 : vector<1x256xf32> to vector<32x256xf32>
    %19 = arith.mulf %17, %18 : vector<32x256xf32>
    %20 = arith.addf %14, %19 : vector<32x256xf32>
    %21 = vector.extract_strided_slice %3 {offsets = [0, 2], sizes = [32, 1], strides = [1, 1]} : vector<32x4xf32> to vector<32x1xf32>
    %22 = vector.extract_strided_slice %1 {offsets = [2, 0], sizes = [1, 256], strides = [1, 1]} : vector<4x256xf32> to vector<1x256xf32>
    %23 = vector.broadcast %21 : vector<32x1xf32> to vector<32x256xf32>
    %24 = vector.broadcast %22 : vector<1x256xf32> to vector<32x256xf32>
    %25 = arith.mulf %23, %24 : vector<32x256xf32>
    %26 = arith.addf %20, %25 : vector<32x256xf32>
    %27 = vector.extract_strided_slice %3 {offsets = [0, 3], sizes = [32, 1], strides = [1, 1]} : vector<32x4xf32> to vector<32x1xf32>
    %28 = vector.extract_strided_slice %1 {offsets = [3, 0], sizes = [1, 256], strides = [1, 1]} : vector<4x256xf32> to vector<1x256xf32>
    %29 = vector.broadcast %27 : vector<32x1xf32> to vector<32x256xf32>
    %30 = vector.broadcast %28 : vector<1x256xf32> to vector<32x256xf32>
    %31 = arith.mulf %29, %30 : vector<32x256xf32>
    %32 = arith.addf %26, %31 : vector<32x256xf32>
    %33 = vector.broadcast %5 : vector<32x1xf32> to vector<32x256xf32>
    %34 = arith.addf %32, %33 : vector<32x256xf32>
    %cst = arith.constant 0.000000e+00 : f32
    %35 = vector.broadcast %cst : f32 to vector<32x256xf32>
    %36 = arith.maximumf %34, %35 : vector<32x256xf32>
    %37 = arith.truncf %36 : vector<32x256xf32> to vector<32x256xbf16>
    %cst_14 = arith.constant dense<0.000000e+00> : vector<4x256xf32>
    %38 = tpu.matmul %7, %37, %cst_14 {dimension_numbers = #tpu.dot_dimension_numbers<[1], [0], [0], [1], [0, 0, 1, 1], [], []>} : vector<4x32xbf16>, vector<32x256xbf16>, vector<4x256xf32> -> vector<4x256xf32>
    %39 = arith.addf %1, %38 : vector<4x256xf32>
    %40 = vector.broadcast %9 : vector<4x1xf32> to vector<4x256xf32>
    %41 = arith.addf %39, %40 : vector<4x256xf32>
    %c1 = arith.constant 1 : index
    %c0_15 = arith.constant 0 : index
    %c0_16 = arith.constant 0 : index
    %42 = vector.load %arg2[%c1, %c0_15, %c0_16] : memref<3x32x4xf32, #tpu.memory_space<vmem>>, vector<1x32x4xf32>
    %43 = vector.shape_cast %42 : vector<1x32x4xf32> to vector<32x4xf32>
    %c1_17 = arith.constant 1 : index
    %c0_18 = arith.constant 0 : index
    %c0_19 = arith.constant 0 : index
    %44 = vector.load %arg3[%c1_17, %c0_18, %c0_19] : memref<3x32x1xf32, #tpu.memory_space<vmem>>, vector<1x32x1xf32>
    %45 = vector.shape_cast %44 : vector<1x32x1xf32> to vector<32x1xf32>
    %c1_20 = arith.constant 1 : index
    %c0_21 = arith.constant 0 : index
    %c0_22 = arith.constant 0 : index
    %46 = vector.load %arg4[%c1_20, %c0_21, %c0_22] : memref<3x4x32xbf16, #tpu.memory_space<vmem>>, vector<1x4x32xbf16>
    %47 = vector.shape_cast %46 : vector<1x4x32xbf16> to vector<4x32xbf16>
    %c1_23 = arith.constant 1 : index
    %c0_24 = arith.constant 0 : index
    %c0_25 = arith.constant 0 : index
    %48 = vector.load %arg5[%c1_23, %c0_24, %c0_25] : memref<3x4x1xf32, #tpu.memory_space<vmem>>, vector<1x4x1xf32>
    %49 = vector.shape_cast %48 : vector<1x4x1xf32> to vector<4x1xf32>
    %50 = vector.extract_strided_slice %43 {offsets = [0, 0], sizes = [32, 1], strides = [1, 1]} : vector<32x4xf32> to vector<32x1xf32>
    %51 = vector.extract_strided_slice %41 {offsets = [0, 0], sizes = [1, 256], strides = [1, 1]} : vector<4x256xf32> to vector<1x256xf32>
    %52 = vector.broadcast %50 : vector<32x1xf32> to vector<32x256xf32>
    %53 = vector.broadcast %51 : vector<1x256xf32> to vector<32x256xf32>
    %54 = arith.mulf %52, %53 : vector<32x256xf32>
    %55 = vector.extract_strided_slice %43 {offsets = [0, 1], sizes = [32, 1], strides = [1, 1]} : vector<32x4xf32> to vector<32x1xf32>
    %56 = vector.extract_strided_slice %41 {offsets = [1, 0], sizes = [1, 256], strides = [1, 1]} : vector<4x256xf32> to vector<1x256xf32>
    %57 = vector.broadcast %55 : vector<32x1xf32> to vector<32x256xf32>
    %58 = vector.broadcast %56 : vector<1x256xf32> to vector<32x256xf32>
    %59 = arith.mulf %57, %58 : vector<32x256xf32>
    %60 = arith.addf %54, %59 : vector<32x256xf32>
    %61 = vector.extract_strided_slice %43 {offsets = [0, 2], sizes = [32, 1], strides = [1, 1]} : vector<32x4xf32> to vector<32x1xf32>
    %62 = vector.extract_strided_slice %41 {offsets = [2, 0], sizes = [1, 256], strides = [1, 1]} : vector<4x256xf32> to vector<1x256xf32>
    %63 = vector.broadcast %61 : vector<32x1xf32> to vector<32x256xf32>
    %64 = vector.broadcast %62 : vector<1x256xf32> to vector<32x256xf32>
    %65 = arith.mulf %63, %64 : vector<32x256xf32>
    %66 = arith.addf %60, %65 : vector<32x256xf32>
    %67 = vector.extract_strided_slice %43 {offsets = [0, 3], sizes = [32, 1], strides = [1, 1]} : vector<32x4xf32> to vector<32x1xf32>
    %68 = vector.extract_strided_slice %41 {offsets = [3, 0], sizes = [1, 256], strides = [1, 1]} : vector<4x256xf32> to vector<1x256xf32>
    %69 = vector.broadcast %67 : vector<32x1xf32> to vector<32x256xf32>
    %70 = vector.broadcast %68 : vector<1x256xf32> to vector<32x256xf32>
    %71 = arith.mulf %69, %70 : vector<32x256xf32>
    %72 = arith.addf %66, %71 : vector<32x256xf32>
    %73 = vector.broadcast %45 : vector<32x1xf32> to vector<32x256xf32>
    %74 = arith.addf %72, %73 : vector<32x256xf32>
    %cst_26 = arith.constant 0.000000e+00 : f32
    %75 = vector.broadcast %cst_26 : f32 to vector<32x256xf32>
    %76 = arith.maximumf %74, %75 : vector<32x256xf32>
    %77 = arith.truncf %76 : vector<32x256xf32> to vector<32x256xbf16>
    %cst_27 = arith.constant dense<0.000000e+00> : vector<4x256xf32>
    %78 = tpu.matmul %47, %77, %cst_27 {dimension_numbers = #tpu.dot_dimension_numbers<[1], [0], [0], [1], [0, 0, 1, 1], [], []>} : vector<4x32xbf16>, vector<32x256xbf16>, vector<4x256xf32> -> vector<4x256xf32>
    %79 = arith.addf %41, %78 : vector<4x256xf32>
    %80 = vector.broadcast %49 : vector<4x1xf32> to vector<4x256xf32>
    %81 = arith.addf %79, %80 : vector<4x256xf32>
    %c2 = arith.constant 2 : index
    %c0_28 = arith.constant 0 : index
    %c0_29 = arith.constant 0 : index
    %82 = vector.load %arg2[%c2, %c0_28, %c0_29] : memref<3x32x4xf32, #tpu.memory_space<vmem>>, vector<1x32x4xf32>
    %83 = vector.shape_cast %82 : vector<1x32x4xf32> to vector<32x4xf32>
    %c2_30 = arith.constant 2 : index
    %c0_31 = arith.constant 0 : index
    %c0_32 = arith.constant 0 : index
    %84 = vector.load %arg3[%c2_30, %c0_31, %c0_32] : memref<3x32x1xf32, #tpu.memory_space<vmem>>, vector<1x32x1xf32>
    %85 = vector.shape_cast %84 : vector<1x32x1xf32> to vector<32x1xf32>
    %c2_33 = arith.constant 2 : index
    %c0_34 = arith.constant 0 : index
    %c0_35 = arith.constant 0 : index
    %86 = vector.load %arg4[%c2_33, %c0_34, %c0_35] : memref<3x4x32xbf16, #tpu.memory_space<vmem>>, vector<1x4x32xbf16>
    %87 = vector.shape_cast %86 : vector<1x4x32xbf16> to vector<4x32xbf16>
    %c2_36 = arith.constant 2 : index
    %c0_37 = arith.constant 0 : index
    %c0_38 = arith.constant 0 : index
    %88 = vector.load %arg5[%c2_36, %c0_37, %c0_38] : memref<3x4x1xf32, #tpu.memory_space<vmem>>, vector<1x4x1xf32>
    %89 = vector.shape_cast %88 : vector<1x4x1xf32> to vector<4x1xf32>
    %90 = vector.extract_strided_slice %83 {offsets = [0, 0], sizes = [32, 1], strides = [1, 1]} : vector<32x4xf32> to vector<32x1xf32>
    %91 = vector.extract_strided_slice %81 {offsets = [0, 0], sizes = [1, 256], strides = [1, 1]} : vector<4x256xf32> to vector<1x256xf32>
    %92 = vector.broadcast %90 : vector<32x1xf32> to vector<32x256xf32>
    %93 = vector.broadcast %91 : vector<1x256xf32> to vector<32x256xf32>
    %94 = arith.mulf %92, %93 : vector<32x256xf32>
    %95 = vector.extract_strided_slice %83 {offsets = [0, 1], sizes = [32, 1], strides = [1, 1]} : vector<32x4xf32> to vector<32x1xf32>
    %96 = vector.extract_strided_slice %81 {offsets = [1, 0], sizes = [1, 256], strides = [1, 1]} : vector<4x256xf32> to vector<1x256xf32>
    %97 = vector.broadcast %95 : vector<32x1xf32> to vector<32x256xf32>
    %98 = vector.broadcast %96 : vector<1x256xf32> to vector<32x256xf32>
    %99 = arith.mulf %97, %98 : vector<32x256xf32>
    %100 = arith.addf %94, %99 : vector<32x256xf32>
    %101 = vector.extract_strided_slice %83 {offsets = [0, 2], sizes = [32, 1], strides = [1, 1]} : vector<32x4xf32> to vector<32x1xf32>
    %102 = vector.extract_strided_slice %81 {offsets = [2, 0], sizes = [1, 256], strides = [1, 1]} : vector<4x256xf32> to vector<1x256xf32>
    %103 = vector.broadcast %101 : vector<32x1xf32> to vector<32x256xf32>
    %104 = vector.broadcast %102 : vector<1x256xf32> to vector<32x256xf32>
    %105 = arith.mulf %103, %104 : vector<32x256xf32>
    %106 = arith.addf %100, %105 : vector<32x256xf32>
    %107 = vector.extract_strided_slice %83 {offsets = [0, 3], sizes = [32, 1], strides = [1, 1]} : vector<32x4xf32> to vector<32x1xf32>
    %108 = vector.extract_strided_slice %81 {offsets = [3, 0], sizes = [1, 256], strides = [1, 1]} : vector<4x256xf32> to vector<1x256xf32>
    %109 = vector.broadcast %107 : vector<32x1xf32> to vector<32x256xf32>
    %110 = vector.broadcast %108 : vector<1x256xf32> to vector<32x256xf32>
    %111 = arith.mulf %109, %110 : vector<32x256xf32>
    %112 = arith.addf %106, %111 : vector<32x256xf32>
    %113 = vector.broadcast %85 : vector<32x1xf32> to vector<32x256xf32>
    %114 = arith.addf %112, %113 : vector<32x256xf32>
    %cst_39 = arith.constant 0.000000e+00 : f32
    %115 = vector.broadcast %cst_39 : f32 to vector<32x256xf32>
    %116 = arith.maximumf %114, %115 : vector<32x256xf32>
    %117 = arith.truncf %116 : vector<32x256xf32> to vector<32x256xbf16>
    %cst_40 = arith.constant dense<0.000000e+00> : vector<4x256xf32>
    %118 = tpu.matmul %87, %117, %cst_40 {dimension_numbers = #tpu.dot_dimension_numbers<[1], [0], [0], [1], [0, 0, 1, 1], [], []>} : vector<4x32xbf16>, vector<32x256xbf16>, vector<4x256xf32> -> vector<4x256xf32>
    %119 = arith.addf %81, %118 : vector<4x256xf32>
    %120 = vector.broadcast %89 : vector<4x1xf32> to vector<4x256xf32>
    %121 = arith.addf %119, %120 : vector<4x256xf32>
    %122 = vector.shape_cast %121 : vector<4x256xf32> to vector<4x1x256xf32>
    %cst_41 = arith.constant dense<0.000000e+00> : vector<4x1xf32>
    %123 = vector.multi_reduction <add>, %122, %cst_41 [2] : vector<4x1x256xf32> to vector<4x1xf32>
    %cst_42 = arith.constant 2.560000e+02 : f32
    %124 = vector.broadcast %cst_42 : f32 to vector<4x1xf32>
    %125 = arith.divf %123, %124 : vector<4x1xf32>
    %c0_43 = arith.constant 0 : index
    %c0_44 = arith.constant 0 : index
    %c0_45 = arith.constant 0 : index
    %126 = vector.load %arg6[%c0_43, %c0_44, %c0_45] : memref<1x4x1xf32, #tpu.memory_space<vmem>>, vector<1x4x1xf32>
    %127 = vector.shape_cast %126 : vector<1x4x1xf32> to vector<4x1xf32>
    %128 = vector.shape_cast %125 : vector<4x1xf32> to vector<1x4x1xf32>
    tpu.vector_store %arg6[%c0_43, %c0_44, %c0_45], %128 {strides = array<i32>} : memref<1x4x1xf32, #tpu.memory_space<vmem>>, vector<1x4x1xf32>,
    return
  }
  func.func @transform_0(%arg0: i32) -> (i32, i32, i32) {
    %c0_i32 = arith.constant 0 : i32
    %c0_i32_0 = arith.constant 0 : i32
    %c0_i32_1 = arith.constant 0 : i32
    return %arg0, %c0_i32, %c0_i32_0 : i32, i32, i32
  }
  func.func @transform_1(%arg0: i32) -> (i32, i32, i32) {
    %c0_i32 = arith.constant 0 : i32
    %c0_i32_0 = arith.constant 0 : i32
    %c0_i32_1 = arith.constant 0 : i32
    %c0_i32_2 = arith.constant 0 : i32
    return %c0_i32, %c0_i32_0, %c0_i32_1 : i32, i32, i32
  }
  func.func @transform_2(%arg0: i32) -> (i32, i32, i32) {
    %c0_i32 = arith.constant 0 : i32
    %c0_i32_0 = arith.constant 0 : i32
    %c0_i32_1 = arith.constant 0 : i32
    %c0_i32_2 = arith.constant 0 : i32
    return %c0_i32, %c0_i32_0, %c0_i32_1 : i32, i32, i32
  }
  func.func @transform_3(%arg0: i32) -> (i32, i32, i32) {
    %c0_i32 = arith.constant 0 : i32
    %c0_i32_0 = arith.constant 0 : i32
    %c0_i32_1 = arith.constant 0 : i32
    %c0_i32_2 = arith.constant 0 : i32
    return %c0_i32, %c0_i32_0, %c0_i32_1 : i32, i32, i32
  }
  func.func @transform_4(%arg0: i32) -> (i32, i32, i32) {
    %c0_i32 = arith.constant 0 : i32
    %c0_i32_0 = arith.constant 0 : i32
    %c0_i32_1 = arith.constant 0 : i32
    %c0_i32_2 = arith.constant 0 : i32
    return %c0_i32, %c0_i32_0, %c0_i32_1 : i32, i32, i32
  }
  func.func @transform_5(%arg0: i32) -> (i32, i32, i32) {
    %c0_i32 = arith.constant 0 : i32
    %c0_i32_0 = arith.constant 0 : i32
    %c0_i32_1 = arith.constant 0 : i32
    return %arg0, %c0_i32, %c0_i32_0 : i32, i32, i32
  }
}

</mosaic_0001>

<bundles_post_ra>
// kernel: tpu_custom_call.1
= control target key start
LH: loop header
LB: loop body
LE: loop exit
PB: predicated region body
PF: predicated region fallthrough
CT: control target
= control target key end

     0   :  { %s1448_s18 = smov 0   ;;  %s1802_s0 = inlined_call_operand.vmem [shape: f32[2,4,256], index: 0, kind: input, shape index: {}]   ;;  %s1803_s1 = inlined_call_operand.vmem [shape: f32[3,32,4], index: 1, kind: input, shape index: {}]   ;;  %s1804_s2 = inlined_call_operand.vmem [shape: f32[3,32,1], index: 2, kind: input, shape index: {}]   ;;  %s1805_s3 = inlined_call_operand.vmem [shape: bf16[3,4,32], index: 3, kind: input, shape index: {}]   ;;  %s1806_s4 = inlined_call_operand.vmem [shape: f32[3,4,1], index: 4, kind: input, shape index: {}]   ;;  %s1807_s5 = inlined_call_operand.vmem [shape: f32[2,4,1], index: 5, kind: output, shape index: {}]  }
   0x1 LB: > { %s1321_s19 = sadd.s32 4294967295, %s1410_s18   ;;  %p1325_p0 = scmp.ge.s32.totalorder %s1410_s18, 1  ;;  %s1410_s18 = sphi %s1448_s18, %s15_s18  }
   0x2   : > { %p187_p1 = scmp.lt.s32.totalorder %s1410_s18, 3 }
   0x4   : > { %p188_p2 = pnand %p1325_p0, %p187_p1 }
   0x5   : > { %v225_v0 = vld [vmem:[%s1803_s1] sm:$0xff] (!%p188_p2)  ;;  %v1412_v1 = vmov (!%p188_p2), 3   ;;  %v1413_v2 = vmov (!%p188_p2), 1   ;;  %v226_v3 = vld [vmem:[%s1803_s1 + $0x8] sm:$0xff] (!%p188_p2)  ;;  %v1414_v4 = vmov (!%p188_p2), 0   ;;  %v1415_v5 = vmov (!%p188_p2), 2  }
   0x6   : > { %191 = sbr.rel (%p188_p2) target bundleno = 1086 (0x43e), region = 40  ;;  %1373 = vset.pattern.permute.xlu0 (!%p188_p2), %v1412_v1  ;;  %1369 = vset.pattern.permute.xlu1 (!%p188_p2), %v1413_v2  ;;  %v228_v6 = vld [vmem:[%s1803_s1 + $0x18] sm:$0xff] (!%p188_p2)  ;;  %v227_v7 = vld [vmem:[%s1803_s1 + $0x10] sm:$0xff] (!%p188_p2)  ;;  %v229_v8 = vld [vmem:[%s1804_s2] sm:$0xff] (!%p188_p2)  ;;  %p214_p3 = scmp.lt.s32.totalorder (!%p188_p2), %s1321_s19, 1  ;;  %v256_v29 = vlaneseq (!%p188_p2)  ;;  %vm472_vm0 = vcmask (!%p188_p2), 261120  }
   0x7   : > { %383 = vperm.xlu0 (!%p188_p2), %1373, %v225_v0   ;;  %283 = vperm.xlu1 (!%p188_p2), %1369, %v225_v0   ;;  %v232_v9 = vld [vmem:[%s1804_s2 + $0x18] sm:$0xff] (!%p188_p2)  ;;  %v1330_v10 = vld [vmem:[%s1803_s1 + $0x20] sm:$0xff] (!%p188_p2)  ;;  %v1331_v11 = vld [vmem:[%s1803_s1 + $0x28] sm:$0xff] (!%p188_p2)  ;;  %vm1226_vm1 = vcmask (!%p188_p2), 1040384   ;;  %vm1257_vm2 = vcmask (!%p188_p2), 1041409   ;;  %vm1260_vm3 = vcmask (!%p188_p2), 1042434  }
   0x8   : > { %508 = vmatprep.mubr.bf16.mxu0 (!%p188_p2), %v1414_v4  ;;  %821 = vmatprep.mubr.bf16.mxu1 (!%p188_p2), %v1414_v4  ;;  %v230_v12 = vld [vmem:[%s1804_s2 + $0x8] sm:$0xff] (!%p188_p2)  ;;  %v231_v13 = vld [vmem:[%s1804_s2 + $0x10] sm:$0xff] (!%p188_p2)  ;;  %v234_v14 = vld [vmem:[%s1806_s4] sm:$0xf] (!%p188_p2)  ;;  %v1567_v31 = vshrl.u32 (!%p188_p2), %v256_v29, 7  ;;  %vm1263_vm4 = vcmask (!%p188_p2), 1043459  }
   0x9   : > { %v1332_v15 = vld [vmem:[%s1803_s1 + $0x30] sm:$0xff] (!%p188_p2)  ;;  %v1334_v16 = vld [vmem:[%s1804_s2 + $0x20] sm:$0xff] (!%p188_p2)  ;;  %v1333_v17 = vld [vmem:[%s1803_s1 + $0x38] sm:$0xff] (!%p188_p2)  ;;  %vm1266_vm5 = vcmask (!%p188_p2), 3072  }
   0xa   : > { %v1337_v18 = vld [vmem:[%s1804_s2 + $0x38] sm:$0xff] (!%p188_p2)  ;;  %v1524_v19 = vld [vmem:[%s1803_s1 + $0x40] sm:$0xff] (!%p188_p2)  ;;  %v1532_v20 = vld [vmem:[%s1803_s1 + $0x48] sm:$0xff] (!%p188_p2)  ;;  %v1573_v33 = vsub.s32 (!%p188_p2), 0, %v1567_v31  ;;  %v1576_v34 = vsub.s32 (!%p188_p2), 4, %v1567_v31  ;;  %v1579_v35 = vsub.s32 (!%p188_p2), 1, %v1567_v31 }
   0xb   : > { %1374 = vset.pattern.permute.xlu0 (!%p188_p2), %v1415_v5  ;;  %287 = vperm.xlu1 (!%p188_p2), %1369, %v226_v3   ;;  %v1335_v21 = vld [vmem:[%s1804_s2 + $0x28] sm:$0xff] (!%p188_p2)  ;;  %v1336_v22 = vld [vmem:[%s1804_s2 + $0x30] sm:$0xff] (!%p188_p2)  ;;  %v1339_v23 = vld [vmem:[%s1806_s4 + $0x4] sm:$0xf] (!%p188_p2)  ;;  %v1582_v36 = vsub.s32 (!%p188_p2), 5, %v1567_v31  ;;  %v1595_v44 = vsub.s32 (!%p188_p2), 2, %v1567_v31 }
   0xc   : > { %333 = vperm.xlu0 (!%p188_p2), %1374, %v225_v0   ;;  %v1598_v45 = vsub.s32 (!%p188_p2), 6, %v1567_v31  ;;  %v1601_v47 = vsub.s32 (!%p188_p2), 3, %v1567_v31  ;;  %v1604_v48 = vsub.s32 (!%p188_p2), 7, %v1567_v31 }
   0xd   : > { %s1809_s19 = smov (!%p214_p3, %s1321_s19), 1 }
   0xe   : > { %s1354_s12 = sshll.u32 %s1809_s19, 3  ;;  %s1328_s13 = sshll.u32 %s1809_s19, 2 }
   0xf   : > { %1370 = vset.pattern.permute.xlu1 %v1415_v5  ;;  %s218_s15 = scalar_lea.vmem %s1802_s0, %s1354_s12  ;;  %s222_s16 = scalar_lea.vmem %s1807_s5, %s1328_s13 }
  0x10   : > { %345 = vperm.xlu0 %1374, %v228_v6   ;;  %337 = vperm.xlu1 %1370, %v226_v3   ;;  %v1584_v38 = vld [vmem:[%s218_s15] sm:$0xff] }
  0x11   : > { %v259_v40 = vrot.slane %v1584_v38, %v1573_v33  ;;  %v263_v41 = vrot.slane %v1584_v38, %v1576_v34  ;;  %v301_v42 = vrot.slane %v1584_v38, %v1579_v35  ;;  %v305_v43 = vrot.slane %v1584_v38, %v1582_v36 }
  0x12   : > { %v351_v53 = vrot.slane %v1584_v38, %v1595_v44  ;;  %v355_v54 = vrot.slane %v1584_v38, %v1598_v45  ;;  %v401_v56 = vrot.slane %v1584_v38, %v1601_v47  ;;  %v405_v57 = vrot.slane %v1584_v38, %v1604_v48 }
  0x13   : > { %v269_v49 = vrot.slane %v259_v40, %v1573_v33  ;;  %v273_v50 = vrot.slane %v263_v41, %v1573_v33  ;;  %v311_v51 = vrot.slane %v301_v42, %v1579_v35  ;;  %v315_v52 = vrot.slane %v305_v43, %v1579_v35 }
  0x14   : > { %1377 = vset.pattern.permute.xlu0 %v1414_v4  ;;  %1371 = vset.pattern.permute.xlu1 %v1414_v4  ;;  %v361_v63 = vrot.slane %v351_v53, %v1595_v44 }
  0x15   : > { %237 = vperm.xlu0 %1377, %v225_v0   ;;  %247 = vperm.xlu1 %1371, %v227_v7   ;;  %v365_v0 = vrot.slane %v355_v54, %v1595_v44 }
  0x19   : > { %242 = vperm.xlu0 %1377, %v226_v3   ;;  %1372 = vset.pattern.permute.xlu1 %v1413_v2 }
  0x1a   : > { %291 = vperm.xlu1 %1372, %v227_v7  }
  0x1d   : > { %252 = vperm.xlu0 %1377, %v228_v6  }
  0x1e   : > { %295 = vperm.xlu1 %1372, %v228_v6  }
  0x21   : > { %434 = vperm.xlu0 %1377, %v229_v8  }
  0x22   : > { %1375 = vset.pattern.permute.xlu1 %v1412_v1 }
  0x23   : > { %387 = vperm.xlu1 %1375, %v226_v3   ;;  %v411_v3 = vrot.slane %v401_v56, %v1601_v47 }
  0x25   : > { %449 = vperm.xlu0 %1377, %v232_v9  }
  0x27   : > { %1376 = vset.pattern.permute.xlu1 %v1415_v5 }
  0x28   : > { %341 = vperm.xlu1 %1376, %v227_v7  }
  0x29   : > { %551 = vperm.xlu0 %1377, %v1330_v10  }
  0x2c   : > { %1378 = vset.pattern.permute.xlu1 %v1412_v1 }
  0x2d   : > { %391 = vperm.xlu1 %1378, %v227_v7   ;;  %1382 = vset.pattern.permute.xlu0 %v1415_v5 }
  0x2e   : > { %651 = vperm.xlu0 %1382, %v1331_v11  }
  0x31   : > { %395 = vperm.xlu1 %1378, %v228_v6   ;;  %v415_v6 = vrot.slane %v405_v57, %v1601_v47 }
  0x32   : > { %1383 = vset.pattern.permute.xlu0 %v1413_v2 }
  0x33   : > { %597 = vperm.xlu0 %1383, %v1330_v10  }
  0x35   : > { %1379 = vset.pattern.permute.xlu1 %v1414_v4 }
  0x36   : > { %439 = vperm.xlu1 %1379, %v230_v12  }
  0x37   : > { %605 = vperm.xlu0 %1383, %v1332_v15  }
  0x3a   : > { %444 = vperm.xlu1 %1379, %v231_v13  }
  0x3b   : > { %1387 = vset.pattern.permute.xlu0 %v1412_v1 }
  0x3c   : > { %701 = vperm.xlu0 %1387, %v1331_v11  }
  0x3e   : > { %524 = vperm.xlu1 %1379, %v234_v14  }
  0x40   : > { %705 = vperm.xlu0 %1387, %v1332_v15  }
  0x42   : > { %556 = vperm.xlu1 %1379, %v1331_v11  }
  0x44   : > { %1390 = vset.pattern.permute.xlu0 %v1414_v4 }
  0x45   : > { %748 = vperm.xlu0 %1390, %v1334_v16  }
  0x46   : > { %1380 = vset.pattern.permute.xlu1 %v1413_v2 }
  0x47   : > { %601 = vperm.xlu1 %1380, %v1331_v11  }
  0x49   : > { %763 = vperm.xlu0 %1390, %v1337_v18  }
  0x4b   : > { %1381 = vset.pattern.permute.xlu1 %v1415_v5 }
  0x4c   : > { %647 = vperm.xlu1 %1381, %v1330_v10  }
  0x4d   : > { %864 = vperm.xlu0 %1390, %v1524_v19  }
  0x50   : > { %1384 = vset.pattern.permute.xlu1 %v1414_v4 }
  0x51   : > { %561 = vperm.xlu1 %1384, %v1332_v15   ;;  %1394 = vset.pattern.permute.xlu0 %v1415_v5 }
  0x52   : > { %964 = vperm.xlu0 %1394, %v1532_v20  }
  0x55   : > { %566 = vperm.xlu1 %1384, %v1333_v17  }
  0x56   : > { %1395 = vset.pattern.permute.xlu0 %v1413_v2 }
  0x57   : > { %910 = vperm.xlu0 %1395, %v1524_v19  }
  0x59   : > { %1385 = vset.pattern.permute.xlu1 %v1413_v2 }
  0x5a   : > { %609 = vperm.xlu1 %1385, %v1333_v17  }
  0x5e   : > { %1386 = vset.pattern.permute.xlu1 %v1412_v1 }
  0x5f   : > { %697 = vperm.xlu1 %1386, %v1330_v10  }
  0x63   : > { %1388 = vset.pattern.permute.xlu1 %v1415_v5 }
  0x64   : > { %655 = vperm.xlu1 %1388, %v1332_v15  }
  0x68   : > { %659 = vperm.xlu1 %1388, %v1333_v17  }
  0x6c   : > { %1389 = vset.pattern.permute.xlu1 %v1412_v1 }
  0x6d   : > { %709 = vperm.xlu1 %1389, %v1333_v17  }
  0x71   : > { %1391 = vset.pattern.permute.xlu1 %v1414_v4 }
  0x72   : > { %753 = vperm.xlu1 %1391, %v1335_v21  }
  0x76   : > { %758 = vperm.xlu1 %1391, %v1336_v22  }
  0x7a   : > { %837 = vperm.xlu1 %1391, %v1339_v23  }
  0x7e   : > { %869 = vperm.xlu1 %1391, %v1532_v20  }
  0x82   : > { %1392 = vset.pattern.permute.xlu1 %v1413_v2 }
  0x83   : > { %914 = vperm.xlu1 %1392, %v1532_v20  }
  0x86   : > { %v284_v24 = vpop.permute.xlu1 %283  ;;  %v384_v25 = vpop.permute.xlu0 %383 }
  0x87   : > { %1393 = vset.pattern.permute.xlu1 %v1415_v5  ;;  %v316_v61 = vmul.f32 %v311_v51, %v284_v24  ;;  %v317_v62 = vmul.f32 %v315_v52, %v284_v24  ;;  %v416_v21 = vmul.f32 %v411_v3, %v384_v25  ;;  %v417_v22 = vmul.f32 %v415_v6, %v384_v25 }
  0x88   : > { %960 = vperm.xlu1 %1393, %v1524_v19  }
  0x8a   : > { %v1555_v26 = vpop.permute.xlu1 %287 }
  0x8b   : > { %v334_v27 = vpop.permute.xlu0 %333  ;;  %v318_v29 = vmul.f32 %v311_v51, %v1555_v26 }
  0x8c   : > { %1396 = vset.pattern.permute.xlu1 %v1414_v4  ;;  %v366_v7 = vmul.f32 %v361_v63, %v334_v27  ;;  %v367_v8 = vmul.f32 %v365_v0, %v334_v27 }
  0x8f   : > { %v1560_v28 = vpop.permute.xlu1 %337  ;;  %v346_v32 = vpop.permute.xlu0 %345 }
  0x90   : > { %v372_v42 = vmul.f32 %v361_v63, %v346_v32  ;;  %v373_v43 = vmul.f32 %v365_v0, %v346_v32  ;;  %v369_v25 = vmul.f32 %v365_v0, %v1560_v28 }
  0x94   : > { %v248_v30 = vpop.permute.xlu1 %247  ;;  %v238_v39 = vpop.permute.xlu0 %237 }
  0x95   : > { %v274_v59 = vmul.f32 %v269_v49, %v238_v39  ;;  %v275_v60 = vmul.f32 %v273_v50, %v238_v39  ;;  %v319_v39 = vmul.f32 %v315_v52, %v1555_v26  ;;  %v278_v53 = vmul.f32 %v269_v49, %v248_v30 }
  0x96   : > { %v279_v54 = vmul.f32 %v273_v50, %v248_v30 }
  0x97   : > { %v324_v9 = vadd.f32 %v316_v61, %v274_v59  ;;  %v325_v10 = vadd.f32 %v317_v62, %v275_v60 }
  0x98   : > { %v243_v55 = vpop.permute.xlu0 %242 }
  0x99   : > { %v292_v37 = vpop.permute.xlu1 %291  ;;  %v276_v13 = vmul.f32 %v269_v49, %v243_v55  ;;  %v277_v14 = vmul.f32 %v273_v50, %v243_v55  ;;  %v374_v23 = vadd.f32 %v366_v7, %v324_v9  ;;  %v375_v24 = vadd.f32 %v367_v8, %v325_v10 }
  0x9a   : > { %v320_v40 = vmul.f32 %v311_v51, %v292_v37  ;;  %v321_v27 = vmul.f32 %v315_v52, %v292_v37 }
  0x9b   : > { %v326_v55 = vadd.f32 %v318_v29, %v276_v13  ;;  %v327_v56 = vadd.f32 %v319_v39, %v277_v14  ;;  %v424_v60 = vadd.f32 %v416_v21, %v374_v23  ;;  %v425_v61 = vadd.f32 %v417_v22, %v375_v24 }
  0x9c   : > { %v253_v11 = vpop.permute.xlu0 %252  ;;  %v328_v62 = vadd.f32 %v320_v40, %v278_v53  ;;  %v329_v7 = vadd.f32 %v321_v27, %v279_v54 }
  0x9d   : > { %v296_v46 = vpop.permute.xlu1 %295  ;;  %v280_v15 = vmul.f32 %v269_v49, %v253_v11  ;;  %v281_v16 = vmul.f32 %v273_v50, %v253_v11  ;;  %v377_v11 = vadd.f32 %v369_v25, %v327_v56 }
  0x9e   : > { %v322_v17 = vmul.f32 %v311_v51, %v296_v46  ;;  %v323_v18 = vmul.f32 %v315_v52, %v296_v46  ;;  %v368_v46 = vmul.f32 %v361_v63, %v1560_v28 }
  0xa0   : > { %v330_v57 = vadd.f32 %v322_v17, %v280_v15  ;;  %v331_v59 = vadd.f32 %v323_v18, %v281_v16  ;;  %v435_v26 = vpop.permute.xlu0 %434  ;;  %v376_v10 = vadd.f32 %v368_v46, %v326_v55 }
  0xa1   : > { %v452_v13 = vadd.f32 %v435_v26, %v424_v60  ;;  %v453_v14 = vadd.f32 %v435_v26, %v425_v61  ;;  %v233_v61 = vld [vmem:[%s1805_s3] sm:$0x3] }
  0xa2   : > { %v388_v58 = vpop.permute.xlu1 %387  ;;  %v380_v50 = vadd.f32 %v372_v42, %v330_v57  ;;  %v381_v9 = vadd.f32 %v373_v43, %v331_v59  ;;  %v1345_v26 = vld [vmem:[%s1804_s2 + $0x40] sm:$0xff] }
  0xa3   : > { %v418_v51 = vmul.f32 %v411_v3, %v388_v58  ;;  %v419_v37 = vmul.f32 %v415_v6, %v388_v58  ;;  %v461_v40 = vmax.f32 %v453_v14, 0.0 }
  0xa5   : > { %v426_v18 = vadd.f32 %v418_v51, %v376_v10  ;;  %v427_v21 = vadd.f32 %v419_v37, %v377_v11  ;;  %v1348_v51 = vld [vmem:[%s1804_s2 + $0x58] sm:$0xff] }
  0xa7   : > { %v342_v12 = vpop.permute.xlu1 %341 }
  0xa8   : > { %v370_v8 = vmul.f32 %v361_v63, %v342_v12  ;;  %v371_v32 = vmul.f32 %v365_v0, %v342_v12  ;;  %v460_v0 = vmax.f32 %v452_v13, 0.0  ;;  %v450_v12 = vpop.permute.xlu0 %449 }
  0xaa   : > { %v378_v22 = vadd.f32 %v370_v8, %v328_v62  ;;  %v379_v23 = vadd.f32 %v371_v32, %v329_v7  ;;  %v1343_v62 = vld [vmem:[%s1803_s1 + $0x50] sm:$0xff]  ;;  %v1344_v7 = vld [vmem:[%s1803_s1 + $0x58] sm:$0xff] }
  0xab   : > { %874 = vperm.xlu1 %1396, %v1343_v62   ;;  %918 = vperm.xlu0 %1395, %v1343_v62  }
  0xac   : > { %v392_v41 = vpop.permute.xlu1 %391  ;;  %v552_v32 = vpop.permute.xlu0 %551 }
  0xad   : > { %v420_v15 = vmul.f32 %v411_v3, %v392_v41  ;;  %v421_v28 = vmul.f32 %v415_v6, %v392_v41 }
  0xaf   : > { %v428_v29 = vadd.f32 %v420_v15, %v378_v22  ;;  %v429_v39 = vadd.f32 %v421_v28, %v379_v23  ;;  %879 = vperm.xlu1 %1396, %v1344_v7   ;;  %1399 = vset.pattern.permute.xlu0 %v1412_v1 }
  0xb0   : > { %v396_v52 = vpop.permute.xlu1 %395  ;;  %1014 = vperm.xlu0 %1399, %v1532_v20  }
  0xb1   : > { %v422_v49 = vmul.f32 %v411_v3, %v396_v52  ;;  %v423_v30 = vmul.f32 %v415_v6, %v396_v52 }
  0xb3   : > { %v430_v16 = vadd.f32 %v422_v49, %v380_v50  ;;  %v431_v17 = vadd.f32 %v423_v30, %v381_v9  ;;  %1397 = vset.pattern.permute.xlu1 %v1413_v2  ;;  %v1346_v2 = vld [vmem:[%s1804_s2 + $0x48] sm:$0xff]  ;;  %v1416_v50 = vmov 839922192  }
  0xb4   : > { %922 = vperm.xlu1 %1397, %v1344_v7   ;;  %1018 = vperm.xlu0 %1399, %v1343_v62   ;;  %v527_v9 = vunpack.c.l.s4 %v1416_v50 }
  0xb5   : > { %v440_v58 = vpop.permute.xlu1 %439  ;;  %v458_v27 = vadd.f32 %v450_v12, %v430_v16  ;;  %v459_v42 = vadd.f32 %v450_v12, %v431_v17 }
  0xb6   : > { %v454_v24 = vadd.f32 %v440_v58, %v426_v18  ;;  %v455_v63 = vadd.f32 %v440_v58, %v427_v21  ;;  %v528_v11 = vunpack.c.0.s8 %v527_v9 }
  0xb7   : > { %v467_v59 = vmax.f32 %v459_v42, 0.0  ;;  %v466_v46 = vmax.f32 %v458_v27, 0.0 }
  0xb8   : > { %v462_v43 = vmax.f32 %v454_v24, 0.0  ;;  %v463_v53 = vmax.f32 %v455_v63, 0.0  ;;  %1398 = vset.pattern.permute.xlu1 %v1412_v1  ;;  %1402 = vset.pattern.permute.xlu0 %v1414_v4  ;;  %v1668_v14 = vsub.s32 %v528_v11, %v1567_v31 }
  0xb9   : > { %v445_v3 = vpop.permute.xlu1 %444  ;;  %1010 = vperm.xlu1 %1398, %v1524_v19   ;;  %1061 = vperm.xlu0 %1402, %v1345_v26   ;;  %v1347_v19 = vld [vmem:[%s1804_s2 + $0x50] sm:$0xff] }
  0xba   : > { %v456_v6 = vadd.f32 %v445_v3, %v428_v29  ;;  %v457_v41 = vadd.f32 %v445_v3, %v429_v39  ;;  %v469_v54 = vpack.c.bf16 %v463_v53, %v461_v40  ;;  %v468_v55 = vpack.c.bf16 %v462_v43, %v460_v0 }
  0xbc   : > { %v464_v56 = vmax.f32 %v456_v6, 0.0  ;;  %v465_v57 = vmax.f32 %v457_v41, 0.0  ;;  %476 = vmatprep.subr.bf16.mxu0 %v469_v54 }
  0xbd   : > { %477 = vmatpush1.bf16.msra.mxu0 %v468_v55  ;;  %1400 = vset.pattern.permute.xlu1 %v1415_v5  ;;  %v1350_v5 = vld [vmem:[%s1806_s4 + $0x8] sm:$0xf]  ;;  %v525_v20 = vpop.permute.xlu1 %524 }
  0xbe   : > { %v471_v25 = vpack.c.bf16 %v467_v59, %v465_v57  ;;  %v470_v60 = vpack.c.bf16 %v466_v46, %v464_v56  ;;  %1076 = vperm.xlu0 %1402, %v1348_v51   ;;  %968 = vperm.xlu1 %1400, %v1343_v62   ;;  %v532_v23 = vrot.slane %v525_v20, %v1668_v14 }
  0xc0   : > { %478 = vmatprep.subr.bf16.mxu0 %v471_v25 }
  0xc1   : > { %479 = vmatpush1.bf16.msra.mxu0 %v470_v60 }
  0xc2   : > { %972 = vperm.xlu1 %1400, %v1344_v7  }
  0xc4   : > { %1329 = vmatmul.mubr.msk.bf16.vlgmr.msra.gmra.mrb[0].mxu0 %vm472_vm0, %v233_v61 }
  0xc5   : > { %1134 = vmatprep.mubr.bf16.mxu0 %v1414_v4 }
  0xc6   : > { %1401 = vset.pattern.permute.xlu1 %v1412_v1  ;;  %v557_v1 = vpop.permute.xlu1 %556 }
  0xc7   : > { %1022 = vperm.xlu1 %1401, %v1344_v7  }
  0xca   : > { %v602_v37 = vpop.permute.xlu1 %601 }
  0xcb   : > { %1403 = vset.pattern.permute.xlu1 %v1414_v4  ;;  %v652_v4 = vpop.permute.xlu0 %651 }
  0xcc   : > { %1066 = vperm.xlu1 %1403, %v1346_v2  }
  0xce   : > { %v648_v52 = vpop.permute.xlu1 %647 }
  0xcf   : > { %v598_v10 = vpop.permute.xlu0 %597 }
  0xd0   : > { %1071 = vperm.xlu1 %1403, %v1347_v19  }
  0xd2   : > { %v1661_v8 = vpop.permute.xlu1 %561 }
  0xd3   : > { %v606_v15 = vpop.permute.xlu0 %605 }
  0xd4   : > { %1150 = vperm.xlu1 %1403, %v1350_v5  }
  0xd6   : > { %v1663_v49 = vpop.permute.xlu1 %566 }
  0xd7   : > { %v702_v63 = vpop.permute.xlu0 %701 }
  0xda   : > { %v1665_v30 = vpop.permute.xlu1 %609 }
  0xdb   : > { %v706_v25 = vpop.permute.xlu0 %705 }
  0xde   : > { %v698_v13 = vpop.permute.xlu1 %697 }
  0xe3   : > { %v656_v21 = vpop.permute.xlu1 %655 }
  0xe7   : > { %v1682_v40 = vpop.permute.xlu1 %659 }
  0xec   : > { %v710_v5 = vpop.permute.xlu1 %709 }
 0x197   : > { %v510_v28 = vpop.f32.mrb[0].mxu0 }
 0x198   : > { %v512_v16 = vpop.f32.mrb[1].mxu0 }
 0x199   : > { %v519_v17 = vcombine.low %v510_v28, %v512_v16  ;;  %v514_v18 = vpop.f32.mrb[2].mxu0 }
 0x19a   : > { %v515_v22 = vpop.f32.mrb[3].mxu0 }
 0x19b   : > { %v521_v58 = vadd.f32 %v519_v17, %v1584_v38 }
 0x19d   : > { %v1672_v24 = vadd.f32 %v532_v23, %v521_v58 }
 0x19f   : > { %v715_v0 = vrot.slane %v1672_v24, %v1601_v47  ;;  %v719_v12 = vrot.slane %v1672_v24, %v1604_v48  ;;  %v573_v29 = vrot.slane %v1672_v24, %v1573_v33  ;;  %v577_v39 = vrot.slane %v1672_v24, %v1576_v34 }
 0x1a0   : > { %v615_v38 = vrot.slane %v1672_v24, %v1579_v35  ;;  %v619_v27 = vrot.slane %v1672_v24, %v1582_v36  ;;  %v665_v42 = vrot.slane %v1672_v24, %v1595_v44  ;;  %v669_v43 = vrot.slane %v1672_v24, %v1598_v45 }
 0x1a1   : > { %v1693_v53 = vrot.slane %v715_v0, %v1601_v47  ;;  %v1696_v3 = vrot.slane %v719_v12, %v1601_v47  ;;  %v583_v6 = vrot.slane %v573_v29, %v1573_v33  ;;  %v587_v41 = vrot.slane %v577_v39, %v1573_v33 }
 0x1a2   : > { %v625_v54 = vrot.slane %v615_v38, %v1579_v35  ;;  %v629_v55 = vrot.slane %v619_v27, %v1579_v35  ;;  %v675_v56 = vrot.slane %v665_v42, %v1595_v44  ;;  %v679_v57 = vrot.slane %v669_v43, %v1595_v44  ;;  %v754_v42 = vpop.permute.xlu1 %753 }
 0x1a3   : > { %v732_v59 = vmul.f32 %v1693_v53, %v702_v63  ;;  %v733_v46 = vmul.f32 %v1696_v3, %v702_v63  ;;  %v734_v60 = vmul.f32 %v1693_v53, %v706_v25  ;;  %v735_v61 = vmul.f32 %v1696_v3, %v706_v25 }
 0x1a4   : > { %v590_v62 = vmul.f32 %v583_v6, %v557_v1  ;;  %v591_v7 = vmul.f32 %v587_v41, %v557_v1  ;;  %v632_v26 = vmul.f32 %v625_v54, %v602_v37  ;;  %v633_v51 = vmul.f32 %v629_v55, %v602_v37 }
 0x1a5   : > { %v682_v2 = vmul.f32 %v675_v56, %v652_v4  ;;  %v683_v19 = vmul.f32 %v679_v57, %v652_v4  ;;  %v588_v20 = vmul.f32 %v583_v6, %v552_v32  ;;  %v589_v50 = vmul.f32 %v587_v41, %v552_v32 }
 0x1a6   : > { %v630_v9 = vmul.f32 %v625_v54, %v598_v10  ;;  %v631_v11 = vmul.f32 %v629_v55, %v598_v10  ;;  %v640_v28 = vadd.f32 %v632_v26, %v590_v62  ;;  %v641_v16 = vadd.f32 %v633_v51, %v591_v7  ;;  %v749_v51 = vpop.permute.xlu0 %748 }
 0x1a7   : > { %v680_v17 = vmul.f32 %v675_v56, %v648_v52  ;;  %v681_v18 = vmul.f32 %v679_v57, %v648_v52  ;;  %v730_v58 = vmul.f32 %v1693_v53, %v698_v13  ;;  %v731_v63 = vmul.f32 %v1696_v3, %v698_v13 }
 0x1a8   : > { %v638_v22 = vadd.f32 %v630_v9, %v588_v20  ;;  %v639_v23 = vadd.f32 %v631_v11, %v589_v50  ;;  %v690_v1 = vadd.f32 %v682_v2, %v640_v28  ;;  %v691_v0 = vadd.f32 %v683_v19, %v641_v16 }
 0x1a9   : > { %v592_v37 = vmul.f32 %v583_v6, %v1661_v8  ;;  %v593_v4 = vmul.f32 %v587_v41, %v1661_v8  ;;  %v634_v29 = vmul.f32 %v625_v54, %v606_v15  ;;  %v635_v10 = vmul.f32 %v629_v55, %v606_v15 }
 0x1aa   : > { %v688_v12 = vadd.f32 %v680_v17, %v638_v22  ;;  %v689_v32 = vadd.f32 %v681_v18, %v639_v23  ;;  %v740_v39 = vadd.f32 %v732_v59, %v690_v1  ;;  %v741_v38 = vadd.f32 %v733_v46, %v691_v0 }
 0x1ab   : > { %v684_v27 = vmul.f32 %v675_v56, %v656_v21  ;;  %v685_v52 = vmul.f32 %v679_v57, %v656_v21  ;;  %v642_v62 = vadd.f32 %v634_v29, %v592_v37  ;;  %v643_v7 = vadd.f32 %v635_v10, %v593_v4 }
 0x1ac   : > { %v738_v43 = vadd.f32 %v730_v58, %v688_v12  ;;  %v739_v25 = vadd.f32 %v731_v63, %v689_v32  ;;  %v768_v13 = vadd.f32 %v754_v42, %v740_v39  ;;  %v769_v26 = vadd.f32 %v754_v42, %v741_v38  ;;  %v759_v58 = vpop.permute.xlu1 %758 }
 0x1ad   : > { %v594_v2 = vmul.f32 %v583_v6, %v1663_v49  ;;  %v595_v8 = vmul.f32 %v587_v41, %v1663_v49  ;;  %v692_v50 = vadd.f32 %v684_v27, %v642_v62  ;;  %v693_v15 = vadd.f32 %v685_v52, %v643_v7 }
 0x1ae   : > { %v766_v19 = vadd.f32 %v749_v51, %v738_v43  ;;  %v767_v20 = vadd.f32 %v749_v51, %v739_v25  ;;  %v776_v59 = vmax.f32 %v768_v13, 0.0  ;;  %v636_v46 = vmul.f32 %v625_v54, %v1665_v30 }
 0x1af   : > { %v637_v21 = vmul.f32 %v629_v55, %v1665_v30  ;;  %v686_v9 = vmul.f32 %v675_v56, %v1682_v40  ;;  %v742_v28 = vadd.f32 %v734_v60, %v692_v50  ;;  %v743_v16 = vadd.f32 %v735_v61, %v693_v15  ;;  %v764_v61 = vpop.permute.xlu0 %763 }
 0x1b0   : > { %v774_v11 = vmax.f32 %v766_v19, 0.0  ;;  %v687_v17 = vmul.f32 %v679_v57, %v1682_v40  ;;  %v644_v18 = vadd.f32 %v636_v46, %v594_v2  ;;  %v775_v22 = vmax.f32 %v767_v20, 0.0  ;;  %v838_v29 = vpop.permute.xlu1 %837 }
 0x1b1   : > { %v645_v6 = vadd.f32 %v637_v21, %v595_v8  ;;  %v777_v49 = vmax.f32 %v769_v26, 0.0  ;;  %v736_v41 = vmul.f32 %v1693_v53, %v710_v5  ;;  %v737_v23 = vmul.f32 %v1696_v3, %v710_v5  ;;  %v1338_v5 = vld [vmem:[%s1805_s3 + $0x2] sm:$0x3] }
 0x1b2   : > { %v782_v63 = vpack.c.bf16 %v776_v59, %v774_v11  ;;  %v771_v54 = vadd.f32 %v759_v58, %v743_v16  ;;  %v694_v1 = vadd.f32 %v686_v9, %v644_v18  ;;  %v770_v56 = vadd.f32 %v759_v58, %v742_v28 }
 0x1b3   : > { %v695_v30 = vadd.f32 %v687_v17, %v645_v6  ;;  %v783_v55 = vpack.c.bf16 %v777_v49, %v775_v22  ;;  %v865_v42 = vpop.permute.xlu0 %864  ;;  %v845_v50 = vrot.slane %v838_v29, %v1668_v14 }
 0x1b4   : > { %v744_v0 = vadd.f32 %v736_v41, %v694_v1  ;;  %v779_v40 = vmax.f32 %v771_v54, 0.0  ;;  %v778_v4 = vmax.f32 %v770_v56, 0.0  ;;  %v870_v10 = vpop.permute.xlu1 %869 }
 0x1b5   : > { %v745_v60 = vadd.f32 %v737_v23, %v695_v30  ;;  %789 = vmatprep.subr.bf16.mxu1 %v783_v55 }
 0x1b6   : > { %790 = vmatpush1.bf16.msra.mxu1 %v782_v63  ;;  %v772_v57 = vadd.f32 %v764_v61, %v744_v0 }
 0x1b7   : > { %v773_v37 = vadd.f32 %v764_v61, %v745_v60  ;;  %v965_v43 = vpop.permute.xlu0 %964 }
 0x1b8   : > { %v780_v12 = vmax.f32 %v772_v57, 0.0  ;;  %v915_v39 = vpop.permute.xlu1 %914 }
 0x1b9   : > { %v781_v53 = vmax.f32 %v773_v37, 0.0 }
 0x1ba   : > { %v784_v3 = vpack.c.bf16 %v780_v12, %v778_v4 }
 0x1bb   : > { %v785_v32 = vpack.c.bf16 %v781_v53, %v779_v40  ;;  %v911_v62 = vpop.permute.xlu0 %910 }
 0x1bc   : > { %v1724_v38 = vpop.permute.xlu1 %960 }
 0x1bd   : > { %791 = vmatprep.subr.bf16.mxu1 %v785_v32 }
 0x1be   : > { %792 = vmatpush1.bf16.msra.mxu1 %v784_v3 }
 0x1bf   : > { %v1730_v26 = vpop.permute.xlu0 %918 }
 0x1c0   : > { %v1726_v27 = vpop.permute.xlu1 %874 }
 0x1c1   : > { %1340 = vmatmul.mubr.msk.bf16.vlgmr.msra.gmra.mrb[0].mxu1 %vm472_vm0, %v1338_v5 }
 0x1c3   : > { %v1015_v46 = vpop.permute.xlu0 %1014 }
 0x1c4   : > { %v880_v52 = vpop.permute.xlu1 %879 }
 0x1c7   : > { %v1019_v30 = vpop.permute.xlu0 %1018 }
 0x1c8   : > { %v923_v25 = vpop.permute.xlu1 %922 }
 0x1cc   : > { %v1728_v7 = vpop.permute.xlu1 %1010 }
 0x1d0   : > { %v1732_v51 = vpop.permute.xlu1 %968 }
 0x1d4   : > { %v973_v21 = vpop.permute.xlu1 %972 }
 0x1d8   : > { %v1023_v61 = vpop.permute.xlu1 %1022 }
 0x294   : > { %v823_v13 = vpop.f32.mrb[0].mxu1 }
 0x295   : > { %v825_v2 = vpop.f32.mrb[1].mxu1 }
 0x296   : > { %v832_v8 = vcombine.low %v823_v13, %v825_v2  ;;  %v827_v19 = vpop.f32.mrb[2].mxu1 }
 0x297   : > { %v828_v20 = vpop.f32.mrb[3].mxu1 }
 0x298   : > { %v834_v15 = vadd.f32 %v832_v8, %v1672_v24  ;;  %v1062_v20 = vpop.permute.xlu0 %1061 }
 0x29a   : > { %v1736_v59 = vadd.f32 %v845_v50, %v834_v15 }
 0x29c   : > { %v886_v9 = vrot.slane %v1736_v59, %v1573_v33  ;;  %v890_v11 = vrot.slane %v1736_v59, %v1576_v34  ;;  %v928_v28 = vrot.slane %v1736_v59, %v1579_v35  ;;  %v932_v16 = vrot.slane %v1736_v59, %v1582_v36 }
 0x29d   : > { %v978_v17 = vrot.slane %v1736_v59, %v1595_v44  ;;  %v982_v24 = vrot.slane %v1736_v59, %v1598_v45  ;;  %v1028_v18 = vrot.slane %v1736_v59, %v1601_v47  ;;  %v1032_v6 = vrot.slane %v1736_v59, %v1604_v48 }
 0x29e   : > { %v896_v34 = vrot.slane %v886_v9, %v1573_v33  ;;  %v900_v22 = vrot.slane %v890_v11, %v1573_v33  ;;  %v938_v49 = vrot.slane %v928_v28, %v1579_v35  ;;  %v942_v36 = vrot.slane %v932_v16, %v1579_v35 }
 0x29f   : > { %v988_v41 = vrot.slane %v978_v17, %v1595_v44  ;;  %v992_v23 = vrot.slane %v982_v24, %v1595_v44  ;;  %v1038_v45 = vrot.slane %v1028_v18, %v1601_v47  ;;  %v1042_v58 = vrot.slane %v1032_v6, %v1601_v47  ;;  %v1067_v24 = vpop.permute.xlu1 %1066 }
 0x2a0   : > { %v907_v63 = vmul.f32 %v896_v34, %v880_v52  ;;  %v908_v54 = vmul.f32 %v900_v22, %v880_v52  ;;  %v949_v1 = vmul.f32 %v938_v49, %v923_v25  ;;  %v950_v48 = vmul.f32 %v942_v36, %v923_v25 }
 0x2a1   : > { %v999_v55 = vmul.f32 %v988_v41, %v973_v21  ;;  %v1000_v56 = vmul.f32 %v992_v23, %v973_v21  ;;  %v1045_v0 = vmul.f32 %v1038_v45, %v1015_v46  ;;  %v1046_v60 = vmul.f32 %v1042_v58, %v1015_v46 }
 0x2a2   : > { %v957_v40 = vadd.f32 %v949_v1, %v907_v63  ;;  %v958_v57 = vadd.f32 %v950_v48, %v908_v54  ;;  %v1049_v37 = vmul.f32 %v1038_v45, %v1023_v61  ;;  %v1050_v4 = vmul.f32 %v1042_v58, %v1023_v61 }
 0x2a3   : > { %v1047_v12 = vmul.f32 %v1038_v45, %v1019_v30  ;;  %v1048_v44 = vmul.f32 %v1042_v58, %v1019_v30  ;;  %v903_v53 = vmul.f32 %v896_v34, %v870_v10  ;;  %v904_v32 = vmul.f32 %v900_v22, %v870_v10 }
 0x2a4   : > { %v1007_v3 = vadd.f32 %v999_v55, %v957_v40  ;;  %v1008_v47 = vadd.f32 %v1000_v56, %v958_v57  ;;  %v945_v5 = vmul.f32 %v938_v49, %v915_v39  ;;  %v946_v29 = vmul.f32 %v942_v36, %v915_v39 }
 0x2a5   : > { %v995_v52 = vmul.f32 %v988_v41, %v965_v43  ;;  %v996_v25 = vmul.f32 %v992_v23, %v965_v43  ;;  %v901_v13 = vmul.f32 %v896_v34, %v865_v42  ;;  %v902_v2 = vmul.f32 %v900_v22, %v865_v42 }
 0x2a6   : > { %v953_v8 = vadd.f32 %v945_v5, %v903_v53  ;;  %v954_v19 = vadd.f32 %v946_v29, %v904_v32  ;;  %v943_v50 = vmul.f32 %v938_v49, %v911_v62  ;;  %v944_v15 = vmul.f32 %v942_v36, %v911_v62 }
 0x2a7   : > { %v993_v46 = vmul.f32 %v988_v41, %v1724_v38  ;;  %v994_v21 = vmul.f32 %v992_v23, %v1724_v38  ;;  %v1043_v9 = vmul.f32 %v1038_v45, %v1728_v7  ;;  %v1044_v10 = vmul.f32 %v1042_v58, %v1728_v7 }
 0x2a8   : > { %v1003_v11 = vadd.f32 %v995_v52, %v953_v8  ;;  %v1004_v28 = vadd.f32 %v996_v25, %v954_v19  ;;  %v951_v39 = vadd.f32 %v943_v50, %v901_v13  ;;  %v952_v16 = vadd.f32 %v944_v15, %v902_v2 }
 0x2a9   : > { %v905_v43 = vmul.f32 %v896_v34, %v1726_v27  ;;  %v906_v42 = vmul.f32 %v900_v22, %v1726_v27  ;;  %v947_v17 = vmul.f32 %v938_v49, %v1730_v26  ;;  %v948_v62 = vmul.f32 %v942_v36, %v1730_v26  ;;  %v1077_v27 = vpop.permute.xlu0 %1076 }
 0x2aa   : > { %v1053_v18 = vadd.f32 %v1045_v0, %v1003_v11  ;;  %v1054_v6 = vadd.f32 %v1046_v60, %v1004_v28  ;;  %v1001_v38 = vadd.f32 %v993_v46, %v951_v39  ;;  %v1002_v63 = vadd.f32 %v994_v21, %v952_v16 }
 0x2ab   : > { %v955_v45 = vadd.f32 %v947_v17, %v905_v43  ;;  %v956_v54 = vadd.f32 %v948_v62, %v906_v42  ;;  %v997_v7 = vmul.f32 %v988_v41, %v1732_v51  ;;  %v998_v58 = vmul.f32 %v992_v23, %v1732_v51  ;;  %v1072_v51 = vpop.permute.xlu1 %1071 }
 0x2ac   : > { %v1081_v1 = vadd.f32 %v1067_v24, %v1053_v18  ;;  %v1082_v48 = vadd.f32 %v1067_v24, %v1054_v6  ;;  %v1051_v34 = vadd.f32 %v1043_v9, %v1001_v38  ;;  %v1052_v30 = vadd.f32 %v1044_v10, %v1002_v63 }
 0x2ad   : > { %v1005_v22 = vadd.f32 %v997_v7, %v955_v45  ;;  %v1006_v49 = vadd.f32 %v998_v58, %v956_v54  ;;  %v1057_v55 = vadd.f32 %v1049_v37, %v1007_v3  ;;  %v1058_v26 = vadd.f32 %v1050_v4, %v1008_v47 }
 0x2ae   : > { %v1089_v36 = vmax.f32 %v1081_v1, 0.0  ;;  %v1090_v56 = vmax.f32 %v1082_v48, 0.0  ;;  %v1079_v0 = vadd.f32 %v1062_v20, %v1051_v34  ;;  %v1080_v60 = vadd.f32 %v1062_v20, %v1052_v30 }
 0x2af   : > { %v1055_v61 = vadd.f32 %v1047_v12, %v1005_v22  ;;  %v1056_v40 = vadd.f32 %v1048_v44, %v1006_v49  ;;  %v1085_v57 = vadd.f32 %v1077_v27, %v1057_v55  ;;  %v1086_v53 = vadd.f32 %v1077_v27, %v1058_v26  ;;  %v1349_v12 = vld [vmem:[%s1805_s3 + $0x4] sm:$0x3]  ;;  %v1151_v20 = vpop.permute.xlu1 %1150 }
 0x2b0   : > { %v1087_v41 = vmax.f32 %v1079_v0, 0.0  ;;  %v1088_v32 = vmax.f32 %v1080_v60, 0.0  ;;  %v1417_v44 = vmov 1966171168   ;;  %v1158_v9 = vrot.slane %v1151_v20, %v1668_v14 }
 0x2b1   : > { %v1083_v23 = vadd.f32 %v1072_v51, %v1055_v61  ;;  %v1084_v5 = vadd.f32 %v1072_v51, %v1056_v40  ;;  %v1094_v29 = vmax.f32 %v1086_v53, 0.0  ;;  %v1093_v37 = vmax.f32 %v1085_v57, 0.0 }
 0x2b2   : > { %v1095_v52 = vpack.c.bf16 %v1089_v36, %v1087_v41  ;;  %v1096_v25 = vpack.c.bf16 %v1090_v56, %v1088_v32  ;;  %v1163_v47 = vunpack.c.l.s4 %v1417_v44 }
 0x2b3   : > { %v1091_v13 = vmax.f32 %v1083_v23, 0.0  ;;  %v1092_v2 = vmax.f32 %v1084_v5, 0.0 }
 0x2b4   : > { %1102 = vmatprep.subr.bf16.mxu0 %v1096_v25  ;;  %v1164_v19 = vunpack.c.0.s8 %v1163_v47 }
 0x2b5   : > { %1103 = vmatpush1.bf16.msra.mxu0 %v1095_v52  ;;  %v1098_v4 = vpack.c.bf16 %v1094_v29, %v1092_v2  ;;  %v1097_v3 = vpack.c.bf16 %v1093_v37, %v1091_v13 }
 0x2b6   : > { %v1167_v11 = vsub.s32 %v1164_v19, %v1567_v31 }
 0x2b7   : > { %1104 = vmatprep.subr.bf16.mxu0 %v1098_v4 }
 0x2b9   : > { %1105 = vmatpush1.bf16.msra.mxu0 %v1097_v3 }
 0x2bc   : > { %1351 = vmatmul.mubr.msk.bf16.vlgmr.msra.gmra.mrb[4].mxu0 %vm472_vm0, %v1349_v12 }
 0x38f   : > { %v1136_v8 = vpop.f32.mrb[4].mxu0 }
 0x390   : > { %v1138_v50 = vpop.f32.mrb[5].mxu0 }
 0x391   : > { %v1145_v15 = vcombine.low %v1136_v8, %v1138_v50  ;;  %v1140_v46 = vpop.f32.mrb[6].mxu0 }
 0x392   : > { %v1141_v21 = vpop.f32.mrb[7].mxu0 }
 0x393   : > { %v1147_v10 = vadd.f32 %v1145_v15, %v1736_v59 }
 0x395   : > { %v1160_v28 = vadd.f32 %v1158_v9, %v1147_v10 }
 0x397   : > { %v1168_v39 = vrot.slane %v1160_v28, %v1167_v11 }
 0x399   : > { %v1169_v16 = vcombine.high %v1168_v39, %v1168_v39  ;;  %v1176_v43 = vrot.slane %v1168_v39, %v1167_v11 }
 0x39b   : > { %v1184_v42 = vcombine.high %v1176_v43, %v1176_v43  ;;  %v1183_v17 = vrot.slane %v1169_v16, %v1167_v11  ;;  %v1189_v62 = vrot.slane %v1176_v43, %v1573_v33  ;;  %v1193_v24 = vrot.slane %v1176_v43, %v1579_v35 }
 0x39d   : > { %v1205_v18 = vrot.slane %v1184_v42, %v1573_v33  ;;  %v1209_v6 = vrot.slane %v1184_v42, %v1579_v35  ;;  %v1197_v14 = vrot.slane %v1183_v17, %v1573_v33  ;;  %v1201_v59 = vrot.slane %v1183_v17, %v1579_v35 }
 0x39e   : > { %v1185_v31 = vcombine.high %v1183_v17, %v1183_v17  ;;  %v1227_v1 = vsel %vm1226_vm1, %v1189_v62, 0.0  ;;  %v1228_v48 = vsel %vm1226_vm1, %v1193_v24, 0.0 }
 0x39f   : > { %v1237_v38 = vsel %vm1226_vm1, %v1205_v18, 0.0  ;;  %v1238_v63 = vsel %vm1226_vm1, %v1209_v6, 0.0  ;;  %v1232_v45 = vsel %vm1226_vm1, %v1197_v14, 0.0  ;;  %v1233_v54 = vsel %vm1226_vm1, %v1201_v59, 0.0 }
 0x3a0   : > { %v1239_v7 = vadd.f32 %v1238_v63, %v1237_v38  ;;  %v1234_v58 = vadd.f32 %v1233_v54, %v1232_v45  ;;  %v1213_v34 = vrot.slane %v1185_v31, %v1573_v33  ;;  %v1217_v30 = vrot.slane %v1185_v31, %v1579_v35 }
 0x3a1   : > { %v1229_v27 = vadd.f32 %v1228_v48, %v1227_v1 }
 0x3a2   : > { %1240 = vadd.xlane.f32.xlu1 %v1239_v7  ;;  %1235 = vadd.xlane.f32.xlu0 %v1234_v58  ;;  %v1242_v22 = vsel %vm1226_vm1, %v1213_v34, 0.0  ;;  %v1243_v49 = vsel %vm1226_vm1, %v1217_v30, 0.0 }
 0x3a3   : > { %v1244_v55 = vadd.f32 %v1243_v49, %v1242_v22 }
 0x3a6   : > { %1230 = vadd.xlane.f32.xlu0 %v1229_v27 }
 0x3aa   : > { %1245 = vadd.xlane.f32.xlu0 %v1244_v55 }
 0x42f   : > { %v1236_v26 = vpop.xlane.xlu0 %1235  ;;  %v1241_v36 = vpop.xlane.xlu1 %1240 }
 0x430   : > { %v1249_v56 = vmul.f32 0.00390625, %v1236_v26  ;;  %v1250_v61 = vmul.f32 0.00390625, %v1241_v36 }
 0x432   : > { %v1256_v33 = vrot.slane %v1249_v56, 7  ;;  %v1259_v53 = vrot.slane %v1250_v61, 6 }
 0x433   : > { %v1231_v0 = vpop.xlane.xlu0 %1230 }
 0x434   : > { %v1248_v60 = vmul.f32 0.00390625, %v1231_v0 }
 0x436   : > { %v1258_v40 = vsel %vm1257_vm2, %v1256_v33, %v1248_v60 }
 0x437   : > { %v1246_v35 = vpop.xlane.xlu0 %1245  ;;  %v1261_v32 = vsel %vm1260_vm3, %v1259_v53, %v1258_v40 }
 0x438   : > { %v1251_v57 = vmul.f32 0.00390625, %v1246_v35 }
 0x43a   : > { %v1262_v41 = vrot.slane %v1251_v57, 5 }
 0x43c   : > { %v1264_v51 = vsel %vm1263_vm4, %v1262_v41, %v1261_v32 }
 0x43d   : > { %1267 = vst.msk [vmem:[%s222_s16] sm:$0xf] %vm1266_vm5, %v1264_v51 }
 0x43e PF: > { %s15_s18 = sadd.s32 1, %s1410_s18  }
 0x43f   : > { %p12_p4 = scmp.ge.s32.totalorder %s15_s18, 4  }
 0x441   :  { %14 = sbr.rel (!%p12_p4) target bundleno = 1 (0x1), region = 78 }

</bundles_post_ra>
